<compile_context>
chip_gen: v6e
topology: v6e:2x2x1
jax: 0.10.0
libtpu: 0.0.40
codegen_flags: <defaults>
</compile_context>

<pallas_src>
import jax
import jax.numpy as jnp
from jax.experimental import pallas as pl
from jax.experimental.pallas import tpu as pltpu


def _make_phase_gemm_kernel(tile_q, qwp, tm, cin, n_cols):
    """Kernel: one im2col GEMM over `tile_q` output phase-rows of one image."""

    m = tile_q * qwp  # GEMM rows per step (multiple of 8: qwp is padded to 8)

    def kernel(x_ref, w_ref, o_ref):
        # x_ref: (1, tile_q + tm - 1, qwp + tm - 1, cin)   compute dtype (bf16)
        # w_ref: (tm*tm*cin, n_cols)                       compute dtype (bf16)
        # o_ref: (1, tile_q*qwp, n_cols)                    float32
        w = w_ref[...]

        # Build the im2col patch matrix from Tm*Tm shifted slabs (static slices).
        # Column order is (uh, uw, ci) to match the flattened weight.
        slabs = []
        for uh in range(tm):
            for uw in range(tm):
                slab = x_ref[0, uh:uh + tile_q, uw:uw + qwp, :]   # (tile_q, qwp, cin)
                # Collapse leading dims; last dim unchanged and qwp % 8 == 0, so this
                # is a tile-aligned, layout-preserving reshape.
                slabs.append(slab.reshape(m, cin))
        x_col = jnp.concatenate(slabs, axis=-1)                   # (m, tm*tm*cin)

        y = jnp.dot(x_col, w, preferred_element_type=jnp.float32)
        o_ref[0] = y.astype(o_ref.dtype)

    return kernel


def upsample_conv_layer(x_nchw, weight, bias, *, stride, padding=1,
                        compute_dtype=jnp.bfloat16, tile_q_target=8):
    """ConvTranspose2d forward matching PyTorch semantics.

    x_nchw: (N, Cin, H, W)
    weight: (Cin, Cout, K, K)   (PyTorch ConvTranspose2d layout)
    bias:   (Cout,)
    returns (N, Cout, OH, OW) with OH = (H-1)*stride - 2*padding + K
    """
    N, Cin, H, W = x_nchw.shape
    Cin_w, Cout, KH, KW = weight.shape
    assert Cin == Cin_w and KH == KW, "square kernel expected"
    K, s, p = int(KH), int(stride), int(padding)
    OH = (H - 1) * s - 2 * p + K
    OW = (W - 1) * s - 2 * p + K
    assert OH > 0 and OW > 0

    # ---- phase-decomposition geometry -------------------------------------
    Tm = -(-K // s)                         # taps per phase = ceil(K/s)
    Q = (OH - 1 + p) // s + 1               # pre-interleave rows: oh+p = q*s+rh
    Qw = (OW - 1 + p) // s + 1
    Qwp = -(-Qw // 8) * 8                   # pad lane-side spatial to mult. of 8
    n_qt = max(1, -(-Q // tile_q_target))   # spatial grid tiles over q
    tile_q = -(-Q // n_qt)
    Qp = tile_q * n_qt
    rows = tile_q + Tm - 1                  # window height per tile (halo Tm-1)
    Hp = Qp + Tm - 1
    Wpp = Qwp + Tm - 1
    n_cols = s * s * Cout

    # ---- layout glue (plain JAX): NCHW->NHWC, pad, overlapping row windows --
    x = jnp.transpose(x_nchw, (0, 2, 3, 1))                       # (N,H,W,Cin)
    x_pad = jnp.zeros((N, Hp, Wpp, Cin), x.dtype)
    x_pad = x_pad.at[:, Tm - 1:Tm - 1 + H, Tm - 1:Tm - 1 + W, :].set(x)
    x_win = jnp.stack(
        [x_pad[:, t * tile_q:t * tile_q + rows] for t in range(n_qt)], axis=1
    ).reshape(N * n_qt, rows, Wpp, Cin).astype(compute_dtype)

    # ---- phase-decomposed weight, flattened for one im2col GEMM ------------
    # wcol[(uh*Tm+uw)*Cin+ci, (rh*s+rw)*Cout+co]
    #   = weight[ci, co, (Tm-1-uh)*s+rh, (Tm-1-uw)*s+rw]   (0 when index >= K)
    Ks = Tm * s
    w_p = jnp.zeros((Cin, Cout, Ks, Ks), weight.dtype).at[:, :, :K, :K].set(weight)
    w_r = w_p.reshape(Cin, Cout, Tm, s, Tm, s)[:, :, ::-1, :, ::-1, :]
    w_r = jnp.transpose(w_r, (2, 4, 0, 3, 5, 1))       # (uh, uw, ci, rh, rw, co)
    wcol = w_r.reshape(Tm * Tm * Cin, n_cols).astype(compute_dtype)

    kernel = _make_phase_gemm_kernel(tile_q, Qwp, Tm, Cin, n_cols)

    # NOTE: for production shapes (large Cin / spatial), raise tile_q_target and set
    # pltpu.CompilerParams(vmem_limit_bytes=...) per generation; demo tiles are tiny.
    y = pl.pallas_call(
        kernel,
        out_shape=jax.ShapeDtypeStruct((N, Qp * Qwp, n_cols), jnp.float32),
        grid_spec=pltpu.PrefetchScalarGridSpec(
            num_scalar_prefetch=0,
            grid=(N, n_qt),
            in_specs=[
                pl.BlockSpec((1, rows, Wpp, Cin),
                             lambda n, t: (n * n_qt + t, 0, 0, 0)),
                pl.BlockSpec((Tm * Tm * Cin, n_cols), lambda n, t: (0, 0)),
            ],
            out_specs=pl.BlockSpec((1, tile_q * Qwp, n_cols),
                                   lambda n, t: (n, t, 0)),
        ),
        compiler_params=pltpu.CompilerParams(
            dimension_semantics=("parallel", "parallel")),
    )(x_win, wcol)

    # ---- interleave phases (pure layout), crop, bias, back to NCHW ---------
    full = y.reshape(N, Qp, Qwp, s, s, Cout)
    full = jnp.transpose(full, (0, 1, 3, 2, 4, 5)).reshape(N, Qp * s, Qwp * s, Cout)
    out = full[:, p:p + OH, p:p + OW, :] + bias.reshape(1, 1, 1, Cout).astype(jnp.float32)
    out = out.astype(x_nchw.dtype)
    return jnp.transpose(out, (0, 3, 1, 2))


if __name__ == "__main__":
    # Small shapes consistent with the module: ConvTranspose2d(4, 4, k=4, s=2, p=1)
    # => spatial upsample x2: (2, 4, 16, 16) -> (2, 4, 32, 32)
    key = jax.random.PRNGKey(0)
    k_x, k_w, k_b = jax.random.split(key, 3)

    N, Cin, Cout, H, W = 2, 4, 4, 16, 16
    K, stride, pad = 4, 2, 1

    x = jax.random.normal(k_x, (N, Cin, H, W), dtype=jnp.float32)
    weight = jax.random.normal(k_w, (Cin, Cout, K, K), dtype=jnp.float32) * 0.1
    bias = jax.random.normal(k_b, (Cout,), dtype=jnp.float32) * 0.1

    out = upsample_conv_layer(x, weight, bias, stride=stride, padding=pad)
    out = jax.block_until_ready(out)

    # Reference: f32 ConvTranspose on the same bf16-rounded operands the kernel's
    # MXU sees (bf16 x bf16 -> f32 accumulate), via XLA's dilated convolution.
    xq = x.astype(jnp.bfloat16).astype(jnp.float32)
    wq = weight.astype(jnp.bfloat16).astype(jnp.float32)
    w_conv_ref = jnp.transpose(wq[:, :, ::-1, ::-1], (1, 0, 2, 3))   # (O, I, KH, KW)
    ref = jax.lax.conv_general_dilated(
        xq, w_conv_ref,
        window_strides=(1, 1),
        padding=[(K - 1 - pad, K - 1 - pad), (K - 1 - pad, K - 1 - pad)],
        lhs_dilation=(stride, stride),
        dimension_numbers=("NCHW", "OIHW", "NCHW"),
    ) + bias.reshape(1, Cout, 1, 1)

    OH = (H - 1) * stride - 2 * pad + K
    assert out.shape == (N, Cout, OH, OH), out.shape
    assert jnp.allclose(out, ref, atol=2e-3, rtol=2e-3), \
        float(jnp.max(jnp.abs(out - ref)))
    print("KERNEL_OK")
</pallas_src>

<mosaic_0001>
module attributes {stable_mosaic.version = 11 : i64} {
  func.func @kernel(%arg0: i32, %arg1: i32, %arg2: memref<1x7x25x4xbf16, #tpu.memory_space<vmem>>, %arg3: memref<16x16xbf16, #tpu.memory_space<vmem>>, %arg4: memref<1x144x16xf32, #tpu.memory_space<vmem>>) attributes {dimension_semantics = [#tpu.dimension_semantics<parallel>, #tpu.dimension_semantics<parallel>], iteration_bounds = array<i64: 2, 3>, scalar_prefetch = 0 : i64, scratch_operands = 0 : i64, tpu.core_type = #tpu.core_type<tc>, window_params = [{transform_indices = @transform_0, window_bounds = array<i64: 1, 7, 25, 4>}, {pipeline_mode = #tpu.pipeline_mode<synchronous>, transform_indices = @transform_1, window_bounds = array<i64: 16, 16>}, {transform_indices = @transform_2, window_bounds = array<i64: 1, 144, 16>}]} {
    %c0 = arith.constant 0 : index
    %c0_0 = arith.constant 0 : index
    %0 = vector.load %arg3[%c0, %c0_0] : memref<16x16xbf16, #tpu.memory_space<vmem>>, vector<16x16xbf16>
    %c0_1 = arith.constant 0 : index
    %c0_2 = arith.constant 0 : index
    %c0_3 = arith.constant 0 : index
    %c0_4 = arith.constant 0 : index
    %1 = vector.load %arg2[%c0_1, %c0_2, %c0_3, %c0_4] : memref<1x7x25x4xbf16, #tpu.memory_space<vmem>>, vector<1x6x24x4xbf16>
    %2 = vector.shape_cast %1 : vector<1x6x24x4xbf16> to vector<6x24x4xbf16>
    %3 = vector.shape_cast %2 : vector<6x24x4xbf16> to vector<144x4xbf16>
    %c0_5 = arith.constant 0 : index
    %c0_6 = arith.constant 0 : index
    %c1 = arith.constant 1 : index
    %c0_7 = arith.constant 0 : index
    %4 = vector.load %arg2[%c0_5, %c0_6, %c1, %c0_7] : memref<1x7x25x4xbf16, #tpu.memory_space<vmem>>, vector<1x6x24x4xbf16>
    %5 = vector.shape_cast %4 : vector<1x6x24x4xbf16> to vector<6x24x4xbf16>
    %6 = vector.shape_cast %5 : vector<6x24x4xbf16> to vector<144x4xbf16>
    %c0_8 = arith.constant 0 : index
    %c1_9 = arith.constant 1 : index
    %c0_10 = arith.constant 0 : index
    %c0_11 = arith.constant 0 : index
    %7 = vector.load %arg2[%c0_8, %c1_9, %c0_10, %c0_11] : memref<1x7x25x4xbf16, #tpu.memory_space<vmem>>, vector<1x6x24x4xbf16>
    %8 = vector.shape_cast %7 : vector<1x6x24x4xbf16> to vector<6x24x4xbf16>
    %9 = vector.shape_cast %8 : vector<6x24x4xbf16> to vector<144x4xbf16>
    %c0_12 = arith.constant 0 : index
    %c1_13 = arith.constant 1 : index
    %c1_14 = arith.constant 1 : index
    %c0_15 = arith.constant 0 : index
    %10 = vector.load %arg2[%c0_12, %c1_13, %c1_14, %c0_15] : memref<1x7x25x4xbf16, #tpu.memory_space<vmem>>, vector<1x6x24x4xbf16>
    %11 = vector.shape_cast %10 : vector<1x6x24x4xbf16> to vector<6x24x4xbf16>
    %12 = vector.shape_cast %11 : vector<6x24x4xbf16> to vector<144x4xbf16>
    %13 = tpu.concatenate %3, %6, %9, %12 in 1 : vector<144x4xbf16>, vector<144x4xbf16>, vector<144x4xbf16>, vector<144x4xbf16> -> vector<144x16xbf16>
    %cst = arith.constant dense<0.000000e+00> : vector<144x16xf32>
    %14 = tpu.matmul %13, %0, %cst {dimension_numbers = #tpu.dot_dimension_numbers<[1], [0], [0], [1], [0, 0, 1, 1], [], []>} : vector<144x16xbf16>, vector<16x16xbf16>, vector<144x16xf32> -> vector<144x16xf32>
    %c0_16 = arith.constant 0 : index
    %c0_17 = arith.constant 0 : index
    %c0_18 = arith.constant 0 : index
    %15 = vector.load %arg4[%c0_16, %c0_17, %c0_18] : memref<1x144x16xf32, #tpu.memory_space<vmem>>, vector<1x144x16xf32>
    %16 = vector.shape_cast %15 : vector<1x144x16xf32> to vector<144x16xf32>
    %17 = vector.shape_cast %14 : vector<144x16xf32> to vector<1x144x16xf32>
    tpu.vector_store %arg4[%c0_16, %c0_17, %c0_18], %17 {strides = array<i32>} : memref<1x144x16xf32, #tpu.memory_space<vmem>>, vector<1x144x16xf32>,
    return
  }
  func.func @transform_0(%arg0: i32, %arg1: i32) -> (i32, i32, i32, i32) {
    %c3_i32 = arith.constant 3 : i32
    %0 = arith.muli %arg0, %c3_i32 : i32
    %1 = arith.addi %0, %arg1 : i32
    %c0_i32 = arith.constant 0 : i32
    %c0_i32_0 = arith.constant 0 : i32
    %c0_i32_1 = arith.constant 0 : i32
    %c0_i32_2 = arith.constant 0 : i32
    return %1, %c0_i32, %c0_i32_0, %c0_i32_1 : i32, i32, i32, i32
  }
  func.func @transform_1(%arg0: i32, %arg1: i32) -> (i32, i32) {
    %c0_i32 = arith.constant 0 : i32
    %c0_i32_0 = arith.constant 0 : i32
    %c0_i32_1 = arith.constant 0 : i32
    return %c0_i32, %c0_i32_0 : i32, i32
  }
  func.func @transform_2(%arg0: i32, %arg1: i32) -> (i32, i32, i32) {
    %c0_i32 = arith.constant 0 : i32
    %c0_i32_0 = arith.constant 0 : i32
    return %arg0, %arg1, %c0_i32 : i32, i32, i32
  }
}

</mosaic_0001>

<bundles_post_ra>
// kernel: tpu_custom_call.1
= control target key start
LH: loop header
LB: loop body
LE: loop exit
PB: predicated region body
PF: predicated region fallthrough
CT: control target
= control target key end

     0   :  { %s1395_s9 = smov 0   ;;  %s1397_s10 = smov 0   ;;  %s1909_s0 = inlined_call_operand.vmem [shape: bf16[6,7,25,4], index: 0, kind: input, shape index: {}]   ;;  %s1910_s1 = inlined_call_operand.vmem [shape: bf16[16,16], index: 1, kind: input, shape index: {}]   ;;  %s1911_s2 = inlined_call_operand.vmem [shape: f32[2,432,16], index: 2, kind: output, shape index: {}]  }
   0x1   :  { %s1399_s11 = smov 0   ;;  %s1401_s12 = smov 0  }
   0x2   :  { %s1403_s13 = smov 0  }
   0x3 LB: > { %s21_s14 = sadd.s32 1, %s1365_s11  ;;  %s24_s15 = sadd.s32 1, %s1369_s12  ;;  %s1373_s13 = sphi %s1403_s13, %s12_s13   ;;  %s1369_s12 = sphi %s1401_s12, %s1917_s12   ;;  %s1365_s11 = sphi %s1399_s11, %s1916_s11   ;;  %s1361_s10 = sphi %s1397_s10, %s1915_s10   ;;  %s1357_s9 = sphi %s1395_s9, %s1914_s9  }
   0x4   : > { %p22_p0 = scmp.ge.s32.totalorder %s21_s14, 3  ;;  %p1144_p1 = scmp.ge.s32.totalorder %s1373_s13, 1 }
   0x5   : > { %p134_p2 = scmp.lt.s32.totalorder %s1373_s13, 7 }
   0x6   : > { %s1919_s14 = smov (%p22_p0, %s21_s14), 0  ;;  %s1921_s15 = smov (!%p22_p0, %s24_s15), %s1369_s12 }
   0x7   : > { %p135_p3 = pnand %p1144_p1, %p134_p2  ;;  %p26_p4 = scmp.ge.s32.totalorder %s1921_s15, 2 }
   0x8   : > { %s162_s16 = smul.u32 (!%p135_p3), 3, %s1361_s10  ;;  %s1376_s22 = smov (!%p135_p3), 8  }
   0x9   : > { %s1923_s15 = smov (%p26_p4, %s1921_s15), 0  ;;  %138 = sbr.rel (%p135_p3) target bundleno = 417 (0x1a1), region = 28 }
   0xa   : > { %s163_s17 = sadd.s32 (!%p135_p3), %s1357_s9, %s162_s16  ;;  %s1377_s25 = smov (!%p135_p3), 12  }
   0xb   : > { %p164_p5 = scmp.lt.s32.totalorder (!%p135_p3), %s163_s17, 5  ;;  %s1378_s26 = smov (!%p135_p3), 4  }
   0xc   : > { %p172_p6 = scmp.lt.s32.totalorder (!%p135_p3), %s1361_s10, 1  ;;  %s171_s27 = smul.u32 (!%p135_p3), 18, %s1357_s9 }
   0xe   : > { %s1925_s17 = smov (!%p164_p5, %s163_s17), 5  ;;  %vm208_vm0 = vsmask.f32 3328  ;;  %vm209_vm1 = vsmask.f32 7440  ;;  %v1375_v0 = vmov 0.0  }
   0xf   : > { %s1269_s18 = smul.u32 112, %s1925_s17  ;;  %1229 = vmatprep.subr.bf16.mxu0 %v1375_v0  ;;  %1267 = vmatprep.subr.bf16.mxu1 %v1375_v0  ;;  %vm1460_vm2 = vmor %vm208_vm0, %vm209_vm1  ;;  %v1326_v63 = vld [vmem:[%s1910_s1] sm:$0xff]   ;;  %vm1379_vm3 = vmmov 0   ;;  %vm842_vm4 = vcmask 31744   ;;  %vm870_vm5 = vcmask 64512   ;;  %vm889_vm6 = vcmask 97280  }
  0x10   : > { %1230 = vmatpush3.bf16.msra.mxu0 %v1326_v63  ;;  %1268 = vmatpush3.bf16.msra.mxu1 %v1326_v63  ;;  %vm914_vm7 = vcmask 130048   ;;  %s1927_s10 = smov (!%p172_p6, %s1361_s10), 1  ;;  %p174_p7 = scmp.lt.s32.totalorder %s171_s27, 53 }
  0x11   : > { %s1434_s21 = scalar_lea.vmem %s1909_s0, %s1269_s18  ;;  %1231 = vmatprep.mubr.msk.bf16.mxu0 %vm1379_vm3, %v1375_v0  ;;  %1251 = vmatprep.mubr.msk.bf16.mxu1 %vm1379_vm3, %v1375_v0  ;;  %s1270_s28 = smul.u32 54, %s1927_s10 }
  0x12   : > { %v1149_v1 = vld [vmem:[%s1434_s21 + $0x18] sm:$0xf]  ;;  %v1150_v2 = vld [vmem:[%s1434_s21 + $0x20] sm:$0xf]  ;;  %v1147_v3 = vld [vmem:[%s1434_s21 + $0x10] sm:$0xf] }
  0x13   : > { %v475_v4 = vshrl.u32 %v1150_v2, 16  ;;  %v478_v5 = vshll.u32 %v1150_v2, 16  ;;  %v1190_v6 = vcombine.low %v1149_v1, %v1150_v2  ;;  %v460_v7 = vshll.u32 %v1149_v1, 16  ;;  %v1148_v8 = vld [vmem:[%s1434_s21 + $0x14] sm:$0xf]  ;;  %s1929_s27 = smov (!%p174_p7, %s171_s27), 53 }
  0x14   : > { %v464_v9 = vshrl.u32 %v1149_v1, 16  ;;  %v450_v10 = vshll.u32 %v1148_v8, 16  ;;  %v454_v11 = vshrl.u32 %v1148_v8, 16  ;;  %v1189_v12 = vcombine.low %v1147_v3, %v1148_v8  ;;  %v1151_v21 = vld [vmem:[%s1434_s21 + $0x24] sm:$0xf]  ;;  %s177_s29 = sadd.s32 %s1270_s28, %s1929_s27 }
  0x15   : > { %v477_v13 = vrot.slane %v475_v4, 4  ;;  %v480_v14 = vrot.slane %v478_v5, 5  ;;  %781 = vrot.lane.b32.xlu1 %v1190_v6, %s1376_s22  ;;  %v462_v15 = vrot.slane %v460_v7, 5  ;;  %v441_v16 = vshrl.u32 %v1147_v3, 16  ;;  %v1152_v24 = vld [vmem:[%s1434_s21 + $0x28] sm:$0xf] }
  0x16   : > { %v466_v17 = vrot.slane %v464_v9, 4  ;;  %v452_v18 = vrot.slane %v450_v10, 5  ;;  %v456_v19 = vrot.slane %v454_v11, 4  ;;  %779 = vrot.lane.b32.xlu0 %v1189_v12, %s1376_s22  ;;  %v444_v20 = vshll.u32 %v1147_v3, 16  ;;  %v1157_v31 = vld [vmem:[%s1434_s21 + $0x44] sm:$0xf] }
  0x17   : > { %v481_v22 = vor.u32 %v480_v14, %v477_v13  ;;  %v443_v23 = vrot.slane %v441_v16, 4  ;;  %v484_v25 = vshll.u32 %v1151_v21, 16  ;;  %v488_v26 = vshrl.u32 %v1151_v21, 16  ;;  %v1158_v36 = vld [vmem:[%s1434_s21 + $0x48] sm:$0xf]  ;;  %s1146_s30 = sshll.u32 %s177_s29, 3 }
  0x18   : > { %v467_v27 = vor.u32 %v466_v17, %v462_v15  ;;  %v457_v28 = vor.u32 %v456_v19, %v452_v18  ;;  %v446_v29 = vrot.slane %v444_v20, 5  ;;  %v494_v30 = vshll.u32 %v1152_v24, 16  ;;  %v1465_v42 = vld [vmem:[%s1434_s21] sm:$0xf]  ;;  %v1470_v47 = vld [vmem:[%s1434_s21 + $0x4] sm:$0xf]  ;;  %s1856_s5 = scalar_lea.vmem %s1911_s2, %s1146_s30 }
  0x19   : > { %v1447_v32 = vrot.slane %v481_v22, 4  ;;  %v1449_v33 = vrot.slane %v484_v25, 5  ;;  %v1451_v34 = vrot.slane %v488_v26, 4  ;;  %v498_v35 = vshrl.u32 %v1152_v24, 16  ;;  %v1473_v52 = vld [vmem:[%s1434_s21 + $0x8] sm:$0xf] }
  0x1a   : > { %v1454_v37 = vrot.slane %v467_v27, 4  ;;  %v458_v38 = vrot.slane %v457_v28, 4  ;;  %v447_v39 = vor.u32 %v446_v29, %v443_v23  ;;  %v1456_v40 = vrot.slane %v494_v30, 5  ;;  %v202_v57 = vld [vmem:[%s1434_s21 + $0xc] sm:$0x1] }
  0x1b   : > { %v1467_v43 = vrot.slane %v498_v35, 4  ;;  %v1191_v44 = vcombine.low %v1151_v21, %v1152_v24  ;;  %v552_v45 = vshll.u32 %v1157_v31, 16  ;;  %v556_v46 = vshrl.u32 %v1157_v31, 16  ;;  %v1493_v62 = vld [vmem:[%s1434_s21 + $0x10] sm:$0xf] }
  0x1c   : > { %v448_v48 = vrot.slane %v447_v39, 4  ;;  %v562_v49 = vshll.u32 %v1158_v36, 16  ;;  %v566_v50 = vshrl.u32 %v1158_v36, 16  ;;  %v1194_v51 = vcombine.low %v1157_v31, %v1158_v36  ;;  %v1502_v7 = vld [vmem:[%s1434_s21 + $0x14] sm:$0xf] }
  0x1d   : > { %783 = vrot.lane.b32.xlu1 %v1191_v44, %s1376_s22  ;;  %v1476_v53 = vrot.slane %v552_v45, 5  ;;  %v1478_v54 = vrot.slane %v556_v46, 4  ;;  %v463_v55 = vsel %vm1460_vm2, %v458_v38, %v462_v15  ;;  %v212_v56 = vshrl.u32 %v1465_v42, 16  ;;  %v1509_v14 = vld [vmem:[%s1434_s21 + $0x34] sm:$0xf] }
  0x1e   : > { %v1484_v58 = vrot.slane %v562_v49, 5  ;;  %v1486_v59 = vrot.slane %v566_v50, 4  ;;  %789 = vrot.lane.b32.xlu0 %v1194_v51, %s1376_s22  ;;  %v453_v60 = vsel %vm1460_vm2, %v448_v48, %v452_v18  ;;  %v215_v61 = vshll.u32 %v1465_v42, 16  ;;  %v1512_v19 = vld [vmem:[%s1434_s21 + $0x38] sm:$0xf] }
  0x1f   : > { %v1198_v1 = vcombine.low %v453_v60, %v463_v55  ;;  %v214_v2 = vrot.slane %v212_v56, 4  ;;  %v221_v3 = vshll.u32 %v1470_v47, 16  ;;  %v225_v4 = vshrl.u32 %v1470_v47, 16  ;;  %v205_v31 = vld [vmem:[%s1434_s21 + $0x3c] sm:$0x1] }
  0x20   : > { %v217_v5 = vrot.slane %v215_v61, 5  ;;  %v231_v6 = vshll.u32 %v1473_v52, 16  ;;  %v235_v8 = vshrl.u32 %v1473_v52, 16  ;;  %v241_v9 = vshll.u32 %v202_v57, 16  ;;  %v1165_v45 = vld [vmem:[%s1434_s21 + $0x1c] sm:$0x1] }
  0x21   : > { %824 = vrot.lane.b32.xlu1 %v1198_v1, %s1377_s25  ;;  %v223_v10 = vrot.slane %v221_v3, 5  ;;  %v227_v11 = vrot.slane %v225_v4, 4  ;;  %v246_v12 = vshrl.u32 %v1493_v62, 16  ;;  %v249_v13 = vshll.u32 %v1493_v62, 16  ;;  %v1168_v60 = vld [vmem:[%s1434_s21 + $0x4c] sm:$0x1] }
  0x22   : > { %v218_v15 = vor.u32 %v217_v5, %v214_v2  ;;  %v233_v16 = vrot.slane %v231_v6, 5  ;;  %v237_v17 = vrot.slane %v235_v8, 4  ;;  %v243_v18 = vrot.slane %v241_v9, 5  ;;  %v1541_v3 = vld [vmem:[%s1434_s21 + $0x18] sm:$0xf] }
  0x23   : > { %v228_v20 = vor.u32 %v227_v11, %v223_v10  ;;  %v248_v21 = vrot.slane %v246_v12, 4  ;;  %v251_v22 = vrot.slane %v249_v13, 5  ;;  %v255_v23 = vshll.u32 %v1502_v7, 16 }
  0x24   : > { %v219_v24 = vrot.slane %v218_v15, 4  ;;  %v238_v25 = vor.u32 %v237_v17, %v233_v16  ;;  %v323_v26 = vshll.u32 %v1509_v14, 16  ;;  %v327_v27 = vshrl.u32 %v1509_v14, 16  ;;  %v203_v15 = vld [vmem:[%s1434_s21 + $0x1c] sm:$0x1] }
  0x25   : > { %v229_v28 = vrot.slane %v228_v20, 4  ;;  %v252_v29 = vor.u32 %v251_v22, %v248_v21  ;;  %v1517_v30 = vrot.slane %v255_v23, 5  ;;  %v333_v35 = vshll.u32 %v1512_v19, 16  ;;  %v1558_v21 = vld [vmem:[%s1434_s21 + $0x40] sm:$0xf] }
  0x26   : > { %v224_v36 = vsel %vm1460_vm2, %v219_v24, %v223_v10  ;;  %v239_v38 = vrot.slane %v238_v25, 4  ;;  %v1523_v39 = vrot.slane %v323_v26, 5  ;;  %v329_v44 = vrot.slane %v327_v27, 4  ;;  %v1564_v26 = vld [vmem:[%s1434_s21 + $0x44] sm:$0xf] }
  0x27   : > { %v234_v46 = vsel %vm1460_vm2, %v229_v28, %v233_v16  ;;  %v253_v48 = vrot.slane %v252_v29, 4  ;;  %v335_v49 = vrot.slane %v333_v35, 5  ;;  %v337_v50 = vshrl.u32 %v1512_v19, 16 }
  0x28   : > { %v1180_v51 = vcombine.low %v224_v36, %v234_v46  ;;  %v244_v55 = vsel %vm1460_vm2, %v239_v38, %v243_v18  ;;  %v330_v56 = vor.u32 %v329_v44, %v1523_v39  ;;  %v343_v57 = vshll.u32 %v205_v31, 16  ;;  %v1572_v31 = vld [vmem:[%s1434_s21 + $0x48] sm:$0xf] }
  0x29   : > { %v258_v61 = vsel %vm1460_vm2, %v253_v48, %v1517_v30  ;;  %v339_v63 = vrot.slane %v337_v50, 4  ;;  %v470_v1 = vshll.u32 %v1165_v45, 16  ;;  %v487_v2 = vsel %vm1460_vm2, %v1447_v32, %v1449_v33 }
  0x2a   : > { %716 = vrot.lane.b32.xlu0 %v1180_v51, %s1378_s26  ;;  %v1181_v4 = vcombine.low %v244_v55, %v258_v61  ;;  %v331_v5 = vrot.slane %v330_v56, 4  ;;  %v345_v6 = vrot.slane %v343_v57, 5  ;;  %v559_v8 = vor.u32 %v1478_v54, %v1476_v53  ;;  %v1166_v56 = vld [vmem:[%s1434_s21 + $0x2c] sm:$0x1] }
  0x2b   : > { %v340_v9 = vor.u32 %v339_v63, %v335_v49  ;;  %v472_v10 = vrot.slane %v470_v1, 5  ;;  %v569_v11 = vor.u32 %v1486_v59, %v1484_v58  ;;  %v572_v12 = vshll.u32 %v1168_v60, 16  ;;  %v1586_v63 = vld [vmem:[%s1434_s21 + $0x50] sm:$0xf] }
  0x2c   : > { %718 = vrot.lane.b32.xlu1 %v1181_v4, %s1378_s26  ;;  %v336_v32 = vsel %vm1460_vm2, %v331_v5, %v335_v49  ;;  %v560_v13 = vrot.slane %v559_v8, 4  ;;  %v259_v16 = vshrl.u32 %v1502_v7, 16  ;;  %v265_v17 = vshll.u32 %v1541_v3, 16 }
  0x2d   : > { %v341_v54 = vrot.slane %v340_v9, 4  ;;  %v473_v18 = vsel %vm1460_vm2, %v1454_v37, %v472_v10  ;;  %v570_v59 = vrot.slane %v569_v11, 4  ;;  %v574_v20 = vrot.slane %v572_v12, 5 }
  0x2e   : > { %v1199_v22 = vcombine.low %v473_v18, %v487_v2  ;;  %v565_v23 = vsel %vm1460_vm2, %v560_v13, %v1484_v58  ;;  %v261_v24 = vrot.slane %v259_v16, 4  ;;  %v267_v25 = vrot.slane %v265_v17, 5  ;;  %v1604_v17 = vld [vmem:[%s1434_s21 + $0x20] sm:$0xf] }
  0x2f   : > { %v346_v27 = vsel %vm1460_vm2, %v341_v54, %v345_v6  ;;  %v575_v28 = vsel %vm1460_vm2, %v570_v59, %v574_v20  ;;  %v269_v37 = vshrl.u32 %v1541_v3, 16  ;;  %v275_v29 = vshll.u32 %v203_v15, 16 }
  0x30   : > { %v1185_v35 = vcombine.low %v336_v32, %v346_v27  ;;  %826 = vrot.lane.b32.xlu1 %v1199_v22, %s1377_s25  ;;  %v1203_v58 = vcombine.low %v565_v23, %v575_v28  ;;  %v262_v36 = vor.u32 %v261_v24, %v1517_v30  ;;  %v348_v38 = vshrl.u32 %v1558_v21, 16  ;;  %v1611_v27 = vld [vmem:[%s1434_s21 + $0x24] sm:$0xf] }
  0x31   : > { %v271_v44 = vrot.slane %v269_v37, 4  ;;  %v277_v45 = vrot.slane %v275_v29, 5  ;;  %v351_v46 = vshll.u32 %v1558_v21, 16  ;;  %v357_v48 = vshll.u32 %v1564_v26, 16 }
  0x32   : > { %726 = vrot.lane.b32.xlu0 %v1185_v35, %s1378_s26  ;;  %v263_v49 = vrot.slane %v262_v36, 4  ;;  %v350_v50 = vrot.slane %v348_v38, 4  ;;  %v361_v51 = vshrl.u32 %v1564_v26, 16  ;;  %v367_v55 = vshll.u32 %v1572_v31, 16 }
  0x33   : > { %v272_v57 = vor.u32 %v271_v44, %v267_v25  ;;  %v353_v30 = vrot.slane %v351_v46, 5  ;;  %v359_v60 = vrot.slane %v357_v48, 5  ;;  %v491_v61 = vor.u32 %v1451_v34, %v1449_v33  ;;  %v1160_v34 = vld [vmem:[%s1434_s21 + $0x54] sm:$0xf]  ;;  %v1627_v46 = vld [vmem:[%s1434_s21 + $0x30] sm:$0xf] }
  0x34   : > { %v268_v1 = vsel %vm1460_vm2, %v263_v49, %v267_v25  ;;  %v363_v2 = vrot.slane %v361_v51, 4  ;;  %v1590_v4 = vrot.slane %v367_v55, 5  ;;  %v501_v5 = vor.u32 %v1467_v43, %v1456_v40 }
  0x35   : > { %v273_v6 = vrot.slane %v272_v57, 4  ;;  %v354_v8 = vor.u32 %v353_v30, %v350_v50  ;;  %v492_v9 = vrot.slane %v491_v61, 4  ;;  %v504_v10 = vshll.u32 %v1166_v56, 16 }
  0x36   : > { %834 = vrot.lane.b32.xlu0 %v1203_v58, %s1377_s25  ;;  %v364_v11 = vor.u32 %v363_v2, %v359_v60  ;;  %v502_v33 = vrot.slane %v501_v5, 4  ;;  %v577_v12 = vshrl.u32 %v1586_v63, 16  ;;  %v580_v32 = vshll.u32 %v1586_v63, 16  ;;  %v1623_v58 = vld [vmem:[%s1434_s21 + $0x58] sm:$0xf] }
  0x37   : > { %v278_v13 = vsel %vm1460_vm2, %v273_v6, %v277_v45  ;;  %v355_v15 = vrot.slane %v354_v8, 4  ;;  %v497_v43 = vsel %vm1460_vm2, %v492_v9, %v1456_v40  ;;  %v506_v16 = vrot.slane %v504_v10, 5  ;;  %v1614_v40 = vld [vmem:[%s1434_s21 + $0x28] sm:$0xf] }
  0x38   : > { %v1182_v54 = vcombine.low %v268_v1, %v278_v13  ;;  %v365_v18 = vrot.slane %v364_v11, 4  ;;  %v579_v59 = vrot.slane %v577_v12, 4  ;;  %v582_v20 = vrot.slane %v580_v32, 5 }
  0x39   : > { %v360_v22 = vsel %vm1460_vm2, %v355_v15, %v359_v60  ;;  %v507_v23 = vsel %vm1460_vm2, %v502_v33, %v506_v16  ;;  %v586_v24 = vshll.u32 %v1160_v34, 16  ;;  %v590_v25 = vshrl.u32 %v1160_v34, 16  ;;  %v1635_v60 = vld [vmem:[%s1434_s21 + $0x34] sm:$0xf]  ;;  %v206_v16 = vld [vmem:[%s1434_s21 + $0x4c] sm:$0x1] }
  0x3a   : > { %720 = vrot.lane.b32.xlu1 %v1182_v54, %s1378_s26  ;;  %v370_v28 = vsel %vm1460_vm2, %v365_v18, %v1590_v4  ;;  %v1200_v37 = vcombine.low %v497_v43, %v507_v23  ;;  %v1195_v29 = vcombine.low %v1586_v63, %v1160_v34  ;;  %v280_v35 = vshrl.u32 %v1604_v17, 16  ;;  %v1653_v43 = vld [vmem:[%s1434_s21 + $0x50] sm:$0xf] }
  0x3b   : > { %v1186_v36 = vcombine.low %v360_v22, %v370_v28  ;;  %v588_v38 = vrot.slane %v586_v24, 5  ;;  %v592_v44 = vrot.slane %v590_v25, 4  ;;  %v283_v45 = vshll.u32 %v1604_v17, 16  ;;  %v1657_v22 = vld [vmem:[%s1434_s21 + $0x54] sm:$0xf] }
  0x3c   : > { %v282_v48 = vrot.slane %v280_v35, 4  ;;  %v289_v49 = vshll.u32 %v1611_v27, 16  ;;  %v293_v50 = vshrl.u32 %v1611_v27, 16  ;;  %v299_v51 = vshll.u32 %v1614_v40, 16 }
  0x3d   : > { %728 = vrot.lane.b32.xlu0 %v1186_v36, %s1378_s26  ;;  %v285_v55 = vrot.slane %v283_v45, 5  ;;  %v583_v56 = vor.u32 %v582_v20, %v579_v59  ;;  %v593_v57 = vor.u32 %v592_v44, %v588_v38  ;;  %v596_v30 = vshll.u32 %v1623_v58, 16 }
  0x3e   : > { %828 = vrot.lane.b32.xlu1 %v1200_v37, %s1377_s25  ;;  %v291_v61 = vrot.slane %v289_v49, 5  ;;  %v295_v63 = vrot.slane %v293_v50, 4  ;;  %v1638_v1 = vrot.slane %v299_v51, 5  ;;  %v509_v2 = vshrl.u32 %v1627_v46, 16  ;;  %v1675_v49 = vld [vmem:[%s1434_s21 + $0x60] sm:$0xf] }
  0x3f   : > { %v286_v5 = vor.u32 %v285_v55, %v282_v48  ;;  %v584_v6 = vrot.slane %v583_v56, 4  ;;  %v594_v8 = vrot.slane %v593_v57, 4  ;;  %v1641_v9 = vrot.slane %v596_v30, 5 }
  0x40   : > { %v296_v10 = vor.u32 %v295_v63, %v291_v61  ;;  %v511_v11 = vrot.slane %v509_v2, 4  ;;  %v512_v33 = vshll.u32 %v1627_v46, 16  ;;  %v518_v34 = vshll.u32 %v1635_v60, 16  ;;  %v1683_v63 = vld [vmem:[%s1434_s21 + $0x30] sm:$0xf] }
  0x41   : > { %791 = vrot.lane.b32.xlu0 %v1195_v29, %s1376_s22  ;;  %v287_v12 = vrot.slane %v286_v5, 4  ;;  %v589_v32 = vsel %vm1460_vm2, %v584_v6, %v588_v38  ;;  %v599_v13 = vsel %vm1460_vm2, %v594_v8, %v1641_v9  ;;  %v522_v15 = vshrl.u32 %v1635_v60, 16  ;;  %v1670_v38 = vld [vmem:[%s1434_s21 + $0x38] sm:$0xf] }
  0x42   : > { %v297_v54 = vrot.slane %v296_v10, 4  ;;  %v1204_v18 = vcombine.low %v589_v32, %v599_v13  ;;  %v514_v59 = vrot.slane %v512_v33, 5  ;;  %v520_v20 = vrot.slane %v518_v34, 5  ;;  %v204_v10 = vld [vmem:[%s1434_s21 + $0x2c] sm:$0x1] }
  0x43   : > { %v292_v23 = vsel %vm1460_vm2, %v287_v12, %v291_v61  ;;  %v524_v24 = vrot.slane %v522_v15, 4  ;;  %v1192_v25 = vcombine.low %v1627_v46, %v1635_v60  ;;  %v371_v28 = vshrl.u32 %v1572_v31, 16 }
  0x44   : > { %v302_v37 = vsel %vm1460_vm2, %v297_v54, %v1638_v1  ;;  %v377_v29 = vshll.u32 %v206_v16, 16  ;;  %v382_v35 = vshrl.u32 %v1653_v43, 16  ;;  %v385_v36 = vshll.u32 %v1653_v43, 16 }
  0x45   : > { %v1183_v44 = vcombine.low %v292_v23, %v302_v37  ;;  %836 = vrot.lane.b32.xlu0 %v1204_v18, %s1377_s25  ;;  %v373_v45 = vrot.slane %v371_v28, 4  ;;  %v391_v46 = vshll.u32 %v1657_v22, 16  ;;  %v515_v48 = vor.u32 %v514_v59, %v511_v11 }
  0x46   : > { %v379_v50 = vrot.slane %v377_v29, 5  ;;  %v384_v51 = vrot.slane %v382_v35, 4  ;;  %v387_v55 = vrot.slane %v385_v36, 5  ;;  %v525_v56 = vor.u32 %v524_v24, %v520_v20  ;;  %v1711_v29 = vld [vmem:[%s1434_s21 + $0x40] sm:$0xf] }
  0x47   : > { %722 = vrot.lane.b32.xlu1 %v1183_v44, %s1378_s26  ;;  %v374_v57 = vor.u32 %v373_v45, %v1590_v4  ;;  %v1679_v30 = vrot.slane %v391_v46, 5  ;;  %v516_v60 = vrot.slane %v515_v48, 4  ;;  %v528_v61 = vshll.u32 %v1670_v38, 16 }
  0x48   : > { %v388_v2 = vor.u32 %v387_v55, %v384_v51  ;;  %v526_v5 = vrot.slane %v525_v56, 4  ;;  %v611_v6 = vshrl.u32 %v1675_v49, 16  ;;  %v614_v8 = vshll.u32 %v1675_v49, 16 }
  0x49   : > { %v375_v11 = vrot.slane %v374_v57, 4  ;;  %v521_v33 = vsel %vm1460_vm2, %v516_v60, %v520_v20  ;;  %v1690_v4 = vrot.slane %v528_v61, 5  ;;  %v1196_v34 = vcombine.low %v1623_v58, %v1675_v49  ;;  %v1169_v20 = vld [vmem:[%s1434_s21 + $0x5c] sm:$0x1] }
  0x4a   : > { %v389_v12 = vrot.slane %v388_v2, 4  ;;  %v613_v32 = vrot.slane %v611_v6, 4  ;;  %v616_v13 = vrot.slane %v614_v8, 5  ;;  %v303_v15 = vshrl.u32 %v1614_v40, 16 }
  0x4b   : > { %785 = vrot.lane.b32.xlu1 %v1192_v25, %s1376_s22  ;;  %v380_v16 = vsel %vm1460_vm2, %v375_v11, %v379_v50  ;;  %v531_v54 = vsel %vm1460_vm2, %v526_v5, %v1690_v4  ;;  %v309_v18 = vshll.u32 %v204_v10, 16  ;;  %v314_v59 = vshrl.u32 %v1683_v63, 16  ;;  %v1708_v25 = vld [vmem:[%s1434_s21 + $0x64] sm:$0xf]  ;;  %v207_v11 = vld [vmem:[%s1434_s21 + $0x5c] sm:$0x1] }
  0x4c   : > { %v394_v23 = vsel %vm1460_vm2, %v389_v12, %v1679_v30  ;;  %v1201_v24 = vcombine.low %v521_v33, %v531_v54  ;;  %v305_v28 = vrot.slane %v303_v15, 4  ;;  %v317_v37 = vshll.u32 %v1683_v63, 16 }
  0x4d   : > { %v1187_v35 = vcombine.low %v380_v16, %v394_v23  ;;  %v311_v36 = vrot.slane %v309_v18, 5  ;;  %v316_v44 = vrot.slane %v314_v59, 4  ;;  %v600_v45 = vshrl.u32 %v1623_v58, 16  ;;  %v1167_v18 = vld [vmem:[%s1434_s21 + $0x3c] sm:$0x1] }
  0x4e   : > { %v306_v46 = vor.u32 %v305_v28, %v1638_v1  ;;  %v319_v48 = vrot.slane %v317_v37, 5  ;;  %v606_v49 = vshll.u32 %v1169_v20, 16  ;;  %v617_v50 = vor.u32 %v616_v13, %v613_v32  ;;  %v1721_v1 = vld [vmem:[%s1434_s21 + $0x58] sm:$0xf]  ;;  %v1164_v28 = vld [vmem:[%s1434_s21 + $0x68] sm:$0xf] }
  0x4f   : > { %730 = vrot.lane.b32.xlu0 %v1187_v35, %s1378_s26  ;;  %830 = vrot.lane.b32.xlu1 %v1201_v24, %s1377_s25  ;;  %v602_v51 = vrot.slane %v600_v45, 4  ;;  %v620_v55 = vshll.u32 %v1708_v25, 16  ;;  %v543_v56 = vshrl.u32 %v1711_v29, 16  ;;  %v546_v57 = vshll.u32 %v1711_v29, 16 }
  0x50   : > { %v307_v60 = vrot.slane %v306_v46, 4  ;;  %v320_v61 = vor.u32 %v319_v48, %v316_v44  ;;  %v608_v58 = vrot.slane %v606_v49, 5  ;;  %v618_v2 = vrot.slane %v617_v50, 4 }
  0x51   : > { %v603_v5 = vor.u32 %v602_v51, %v1641_v9  ;;  %v1724_v6 = vrot.slane %v620_v55, 5  ;;  %v545_v8 = vrot.slane %v543_v56, 4  ;;  %v548_v10 = vrot.slane %v546_v57, 5  ;;  %v1170_v56 = vld [vmem:[%s1434_s21 + $0x6c] sm:$0x1] }
  0x52   : > { %v312_v33 = vsel %vm1460_vm2, %v307_v60, %v311_v36  ;;  %v321_v12 = vrot.slane %v320_v61, 4  ;;  %v1193_v32 = vcombine.low %v1670_v38, %v1711_v29  ;;  %v395_v13 = vshrl.u32 %v1657_v22, 16 }
  0x53   : > { %793 = vrot.lane.b32.xlu0 %v1196_v34, %s1376_s22  ;;  %v604_v15 = vrot.slane %v603_v5, 4  ;;  %v623_v9 = vsel %vm1460_vm2, %v618_v2, %v1724_v6  ;;  %v401_v16 = vshll.u32 %v1721_v1, 16  ;;  %v405_v54 = vshrl.u32 %v1721_v1, 16 }
  0x54   : > { %v326_v59 = vsel %vm1460_vm2, %v321_v12, %v1523_v39  ;;  %v397_v20 = vrot.slane %v395_v13, 4  ;;  %v411_v23 = vshll.u32 %v207_v11, 16  ;;  %v532_v24 = vshrl.u32 %v1670_v38, 16 }
  0x55   : > { %v1184_v34 = vcombine.low %v312_v33, %v326_v59  ;;  %v609_v37 = vsel %vm1460_vm2, %v604_v15, %v608_v58  ;;  %v403_v29 = vrot.slane %v401_v16, 5  ;;  %v407_v35 = vrot.slane %v405_v54, 4 }
  0x56   : > { %v1205_v36 = vcombine.low %v609_v37, %v623_v9  ;;  %v398_v44 = vor.u32 %v397_v20, %v1679_v30  ;;  %v413_v45 = vrot.slane %v411_v23, 5  ;;  %v534_v46 = vrot.slane %v532_v24, 4 }
  0x57   : > { %724 = vrot.lane.b32.xlu1 %v1184_v34, %s1378_s26  ;;  %v408_v39 = vor.u32 %v407_v35, %v403_v29  ;;  %v538_v48 = vshll.u32 %v1167_v18, 16  ;;  %v549_v49 = vor.u32 %v548_v10, %v545_v8  ;;  %v630_v50 = vshll.u32 %v1164_v28, 16 }
  0x58   : > { %838 = vrot.lane.b32.xlu0 %v1205_v36, %s1377_s25  ;;  %v399_v38 = vrot.slane %v398_v44, 4  ;;  %v535_v51 = vor.u32 %v534_v46, %v1690_v4  ;;  %v634_v55 = vshrl.u32 %v1164_v28, 16  ;;  %v624_v11 = vshrl.u32 %v1708_v25, 16 }
  0x59   : > { %v409_v57 = vrot.slane %v408_v39, 4  ;;  %v540_v60 = vrot.slane %v538_v48, 5  ;;  %v550_v61 = vrot.slane %v549_v49, 4  ;;  %v632_v58 = vrot.slane %v630_v50, 5 }
  0x5a   : > { %v404_v30 = vsel %vm1460_vm2, %v399_v38, %v403_v29  ;;  %v536_v2 = vrot.slane %v535_v51, 4  ;;  %v636_v5 = vrot.slane %v634_v55, 4  ;;  %v640_v10 = vshll.u32 %v1170_v56, 16 }
  0x5b   : > { %787 = vrot.lane.b32.xlu1 %v1193_v32, %s1376_s22  ;;  %v414_v8 = vsel %vm1460_vm2, %v409_v57, %v413_v45  ;;  %v555_v4 = vsel %vm1460_vm2, %v550_v61, %v1476_v53  ;;  %v1171_v33 = vcombine.low %v1465_v42, %v1470_v47  ;;  %v626_v15 = vrot.slane %v624_v11, 4 }
  0x5c   : > { %v1188_v12 = vcombine.low %v404_v30, %v414_v8  ;;  %v541_v13 = vsel %vm1460_vm2, %v536_v2, %v540_v60  ;;  %v637_v9 = vor.u32 %v636_v5, %v632_v58  ;;  %v1197_v32 = vcombine.low %v1708_v25, %v1164_v28 }
  0x5d   : > { %v1202_v16 = vcombine.low %v541_v13, %v555_v4  ;;  %v642_v54 = vrot.slane %v640_v10, 5  ;;  %v627_v18 = vor.u32 %v626_v15, %v1724_v6  ;;  %v1172_v53 = vcombine.low %v1473_v52, %v1493_v62 }
  0x5e   : > { %732 = vrot.lane.b32.xlu0 %v1188_v12, %s1378_s26  ;;  %v638_v59 = vrot.slane %v637_v9, 4  ;;  %v1176_v42 = vcombine.low %v1509_v14, %v1512_v19  ;;  %v1173_v47 = vcombine.low %v1502_v7, %v1541_v3  ;;  %v1177_v52 = vcombine.low %v1558_v21, %v1564_v26 }
  0x5f   : > { %832 = vrot.lane.b32.xlu1 %v1202_v16, %s1377_s25  ;;  %v628_v25 = vrot.slane %v627_v18, 4  ;;  %v1174_v62 = vcombine.low %v1604_v17, %v1611_v27  ;;  %v1178_v20 = vcombine.low %v1572_v31, %v1653_v43  ;;  %v1175_v14 = vcombine.low %v1614_v40, %v1683_v63 }
  0x60   : > { %v643_v6 = vsel %vm1460_vm2, %v638_v59, %v642_v54  ;;  %v1179_v7 = vcombine.low %v1657_v22, %v1721_v1 }
  0x61   : > { %v633_v19 = vsel %vm1460_vm2, %v628_v25, %v632_v58 }
  0x62   : > { %795 = vrot.lane.b32.xlu0 %v1197_v32, %s1376_s22  ;;  %v1206_v3 = vcombine.low %v633_v19, %v643_v6 }
  0x66   : > { %840 = vrot.lane.b32.xlu0 %v1206_v3, %s1377_s25 }
  0x87   : > { %v782_v21 = vpop.permute.xlu1 %781 }
  0x88   : > { %v780_v26 = vpop.permute.xlu0 %779 }
  0x8f   : > { %v784_v17 = vpop.permute.xlu1 %783 }
  0x90   : > { %v790_v27 = vpop.permute.xlu0 %789 }
  0x93   : > { %v825_v23 = vpop.permute.xlu1 %824 }
  0x9c   : > { %v717_v31 = vpop.permute.xlu0 %716 }
  0x9d   : > { %v845_v43 = vsel %vm842_vm4, %v1171_v33, %v717_v31 }
  0x9e   : > { %v872_v24 = vsel %vm870_vm5, %v845_v43, %v780_v26  ;;  %v719_v28 = vpop.permute.xlu1 %718 }
  0x9f   : > { %v891_v41 = vsel %vm889_vm6, %v872_v24, %v825_v23  ;;  %v848_v34 = vsel %vm842_vm4, %v1172_v53, %v719_v28 }
  0xa0   : > { %1232 = vmatmul.mubr.msk.bf16.vlgmr.msra.gmra.mxu0 %vm914_vm7, %v891_v41  ;;  %v874_v36 = vsel %vm870_vm5, %v848_v34, %v782_v21 }
  0xa1   : > { %1235 = vmatprep.mubr.msk.bf16.mxu0 %vm1379_vm3, %v1375_v0 }
  0xa2   : > { %v827_v29 = vpop.permute.xlu1 %826 }
  0xa3   : > { %v893_v44 = vsel %vm889_vm6, %v874_v36, %v827_v29 }
  0xa4   : > { %v727_v37 = vpop.permute.xlu0 %726 }
  0xa5   : > { %v860_v35 = vsel %vm842_vm4, %v1176_v42, %v727_v37 }
  0xa6   : > { %v882_v45 = vsel %vm870_vm5, %v860_v35, %v790_v27 }
  0xa8   : > { %v835_v46 = vpop.permute.xlu0 %834  ;;  %1236 = vmatmul.mubr.msk.bf16.gmra.mxu0 %vm914_vm7, %v893_v44 }
  0xa9   : > { %v901_v39 = vsel %vm889_vm6, %v882_v45, %v835_v46  ;;  %1239 = vmatprep.mubr.msk.bf16.mxu0 %vm1379_vm3, %v1375_v0 }
  0xaa   : > { %1252 = vmatmul.mubr.msk.bf16.vlgmr.msra.gmra.mxu1 %vm914_vm7, %v901_v39 }
  0xab   : > { %1255 = vmatprep.mubr.msk.bf16.mxu1 %vm1379_vm3, %v1375_v0 }
  0xac   : > { %v721_v48 = vpop.permute.xlu1 %720 }
  0xad   : > { %v851_v49 = vsel %vm842_vm4, %v1173_v47, %v721_v48 }
  0xae   : > { %v876_v38 = vsel %vm870_vm5, %v851_v49, %v784_v17 }
  0xaf   : > { %v729_v50 = vpop.permute.xlu0 %728 }
  0xb0   : > { %v829_v51 = vpop.permute.xlu1 %828  ;;  %v863_v57 = vsel %vm842_vm4, %v1177_v52, %v729_v50 }
  0xb1   : > { %v895_v55 = vsel %vm889_vm6, %v876_v38, %v829_v51 }
  0xb2   : > { %1240 = vmatmul.mubr.msk.bf16.gmra.mxu0 %vm914_vm7, %v895_v55 }
  0xb3   : > { %v792_v56 = vpop.permute.xlu0 %791  ;;  %1243 = vmatprep.mubr.msk.bf16.mxu0 %vm1379_vm3, %v1375_v0 }
  0xb4   : > { %v884_v60 = vsel %vm870_vm5, %v863_v57, %v792_v56 }
  0xb7   : > { %v837_v61 = vpop.permute.xlu0 %836 }
  0xb8   : > { %v903_v58 = vsel %vm889_vm6, %v884_v60, %v837_v61 }
  0xb9   : > { %v723_v30 = vpop.permute.xlu1 %722  ;;  %1256 = vmatmul.mubr.msk.bf16.gmra.mxu1 %vm914_vm7, %v903_v58 }
  0xba   : > { %1259 = vmatprep.mubr.msk.bf16.mxu1 %vm1379_vm3, %v1375_v0  ;;  %v854_v5 = vsel %vm842_vm4, %v1174_v62, %v723_v30 }
  0xbd   : > { %v786_v2 = vpop.permute.xlu1 %785 }
  0xbe   : > { %v878_v11 = vsel %vm870_vm5, %v854_v5, %v786_v2 }
  0xc1   : > { %v731_v8 = vpop.permute.xlu0 %730  ;;  %v831_v4 = vpop.permute.xlu1 %830 }
  0xc2   : > { %v897_v10 = vsel %vm889_vm6, %v878_v11, %v831_v4  ;;  %v866_v12 = vsel %vm842_vm4, %v1178_v20, %v731_v8 }
  0xc3   : > { %1244 = vmatmul.mubr.msk.bf16.gmra.mxu0 %vm914_vm7, %v897_v10 }
  0xc4   : > { %1247 = vmatprep.mubr.msk.bf16.mxu0 %vm1379_vm3, %v1375_v0 }
  0xc5   : > { %v794_v33 = vpop.permute.xlu0 %793 }
  0xc6   : > { %v886_v15 = vsel %vm870_vm5, %v866_v12, %v794_v33 }
  0xc9   : > { %v725_v13 = vpop.permute.xlu1 %724 }
  0xca   : > { %v839_v9 = vpop.permute.xlu0 %838  ;;  %v857_v54 = vsel %vm842_vm4, %v1175_v14, %v725_v13 }
  0xcb   : > { %v905_v16 = vsel %vm889_vm6, %v886_v15, %v839_v9 }
  0xcc   : > { %1260 = vmatmul.mubr.msk.bf16.gmra.mxu1 %vm914_vm7, %v905_v16 }
  0xcd   : > { %v788_v32 = vpop.permute.xlu1 %787  ;;  %1263 = vmatprep.mubr.msk.bf16.mxu1 %vm1379_vm3, %v1375_v0 }
  0xce   : > { %v880_v59 = vsel %vm870_vm5, %v857_v54, %v788_v32 }
  0xd0   : > { %v733_v18 = vpop.permute.xlu0 %732 }
  0xd1   : > { %v833_v53 = vpop.permute.xlu1 %832  ;;  %v869_v25 = vsel %vm842_vm4, %v1179_v7, %v733_v18 }
  0xd2   : > { %v899_v42 = vsel %vm889_vm6, %v880_v59, %v833_v53 }
  0xd3   : > { %1248 = vmatmul.mubr.msk.bf16.gmra.mxu0 %vm914_vm7, %v899_v42 }
  0xd4   : > { %v796_v47 = vpop.permute.xlu0 %795 }
  0xd5   : > { %v888_v0 = vsel %vm870_vm5, %v869_v25, %v796_v47 }
  0xd8   : > { %v841_v6 = vpop.permute.xlu0 %840 }
  0xd9   : > { %v907_v40 = vsel %vm889_vm6, %v888_v0, %v841_v6 }
  0xda   : > { %1264 = vmatmul.mubr.msk.bf16.gmra.mxu1 %vm914_vm7, %v907_v40 }
 0x160   : > { %v967_v22 = vpop.f32.mrf.mxu0 }
 0x161   : > { %1038 = vst.msk [vmem:[%s1856_s5] sm:$0xff] %vm914_vm7, %v967_v22 }
 0x162   : > { %v1233_v63 = vpop.f32.mrf.mxu0 }
 0x164   : > { %v970_v1 = vpop.f32.mrf.mxu0 }
 0x165   : > { %1039 = vst.msk [vmem:[%s1856_s5 + $0x8] sm:$0xff] %vm914_vm7, %v970_v1 }
 0x166   : > { %v1234_v52 = vpop.f32.mrf.mxu0 }
 0x168   : > { %v975_v62 = vpop.f32.mrf.mxu0 }
 0x169   : > { %1040 = vst.msk [vmem:[%s1856_s5 + $0x10] sm:$0xff] %vm914_vm7, %v975_v62 }
 0x16a   : > { %v1007_v20 = vpop.f32.mrf.mxu1  ;;  %v1237_v14 = vpop.f32.mrf.mxu0 }
 0x16b   : > { %1048 = vst.msk [vmem:[%s1856_s5 + $0x50] sm:$0xff] %vm914_vm7, %v1007_v20 }
 0x16c   : > { %v1253_v7 = vpop.f32.mrf.mxu1  ;;  %v978_v19 = vpop.f32.mrf.mxu0 }
 0x16d   : > { %1041 = vst.msk [vmem:[%s1856_s5 + $0x18] sm:$0xff] %vm914_vm7, %v978_v19 }
 0x16e   : > { %v1010_v3 = vpop.f32.mrf.mxu1  ;;  %v1238_v21 = vpop.f32.mrf.mxu0 }
 0x16f   : > { %1049 = vst.msk [vmem:[%s1856_s5 + $0x58] sm:$0xff] %vm914_vm7, %v1010_v3 }
 0x170   : > { %v1254_v26 = vpop.f32.mrf.mxu1 }
 0x172   : > { %v983_v17 = vpop.f32.mrf.mxu0 }
 0x173   : > { %1042 = vst.msk [vmem:[%s1856_s5 + $0x20] sm:$0xff] %vm914_vm7, %v983_v17 }
 0x174   : > { %v1241_v27 = vpop.f32.mrf.mxu0 }
 0x176   : > { %v986_v23 = vpop.f32.mrf.mxu0 }
 0x177   : > { %1043 = vst.msk [vmem:[%s1856_s5 + $0x28] sm:$0xff] %vm914_vm7, %v986_v23 }
 0x178   : > { %v1242_v31 = vpop.f32.mrf.mxu0 }
 0x179   : > { %v1015_v43 = vpop.f32.mrf.mxu1 }
 0x17a   : > { %1050 = vst.msk [vmem:[%s1856_s5 + $0x60] sm:$0xff] %vm914_vm7, %v1015_v43 }
 0x17b   : > { %v1257_v24 = vpop.f32.mrf.mxu1 }
 0x17d   : > { %v1018_v28 = vpop.f32.mrf.mxu1 }
 0x17e   : > { %1051 = vst.msk [vmem:[%s1856_s5 + $0x68] sm:$0xff] %vm914_vm7, %v1018_v28 }
 0x17f   : > { %v1258_v41 = vpop.f32.mrf.mxu1 }
 0x183   : > { %v991_v34 = vpop.f32.mrf.mxu0 }
 0x184   : > { %1044 = vst.msk [vmem:[%s1856_s5 + $0x30] sm:$0xff] %vm914_vm7, %v991_v34 }
 0x185   : > { %v1245_v37 = vpop.f32.mrf.mxu0 }
 0x187   : > { %v994_v29 = vpop.f32.mrf.mxu0 }
 0x188   : > { %1045 = vst.msk [vmem:[%s1856_s5 + $0x38] sm:$0xff] %vm914_vm7, %v994_v29 }
 0x189   : > { %v1246_v35 = vpop.f32.mrf.mxu0 }
 0x18c   : > { %v1023_v36 = vpop.f32.mrf.mxu1 }
 0x18d   : > { %1052 = vst.msk [vmem:[%s1856_s5 + $0x70] sm:$0xff] %vm914_vm7, %v1023_v36 }
 0x18e   : > { %v1261_v44 = vpop.f32.mrf.mxu1 }
 0x190   : > { %v1026_v45 = vpop.f32.mrf.mxu1 }
 0x191   : > { %1053 = vst.msk [vmem:[%s1856_s5 + $0x78] sm:$0xff] %vm914_vm7, %v1026_v45 }
 0x192   : > { %v1262_v46 = vpop.f32.mrf.mxu1 }
 0x193   : > { %v999_v39 = vpop.f32.mrf.mxu0 }
 0x194   : > { %1046 = vst.msk [vmem:[%s1856_s5 + $0x40] sm:$0xff] %vm914_vm7, %v999_v39 }
 0x195   : > { %v1249_v48 = vpop.f32.mrf.mxu0 }
 0x197   : > { %v1002_v49 = vpop.f32.mrf.mxu0 }
 0x198   : > { %1047 = vst.msk [vmem:[%s1856_s5 + $0x48] sm:$0xff] %vm914_vm7, %v1002_v49 }
 0x199   : > { %v1250_v50 = vpop.f32.mrf.mxu0 }
 0x19a   : > { %v1031_v38 = vpop.f32.mrf.mxu1 }
 0x19b   : > { %1054 = vst.msk [vmem:[%s1856_s5 + $0x80] sm:$0xff] %vm914_vm7, %v1031_v38 }
 0x19c   : > { %v1265_v51 = vpop.f32.mrf.mxu1 }
 0x19e   : > { %v1034_v55 = vpop.f32.mrf.mxu1 }
 0x19f   : > { %1055 = vst.msk [vmem:[%s1856_s5 + $0x88] sm:$0xff] %vm914_vm7, %v1034_v55 }
 0x1a0   : > { %v1266_v56 = vpop.f32.mrf.mxu1 }
 0x1a1 PF: > { %s12_s13 = sadd.s32 1, %s1373_s13   ;;  %s1914_s9 = smov %s1365_s11 }
 0x1a2   : > { %p9_p8 = scmp.ge.s32.totalorder %s12_s13, 8   ;;  %s1915_s10 = smov %s1369_s12 }
 0x1a3   : > { %s1916_s11 = smov %s1919_s14  ;;  %s1917_s12 = smov %s1923_s15 }
 0x1a4   :  { %11 = sbr.rel (!%p9_p8) target bundleno = 3 (0x3), region = 59 }

</bundles_post_ra>
